<compile_context>
chip_gen: v7x
topology: tpu7x:2x2x1
jax: 0.10.0
libtpu: 0.0.40
codegen_flags: <defaults>
</compile_context>

<pallas_src>
import functools

import jax
import jax.numpy as jnp
from jax import lax
from jax.experimental import pallas as pl
from jax.experimental.pallas import tpu as pltpu


def _round_up(n, m):
    return ((n + m - 1) // m) * m


def _mlp_kernel(x_ref, w1T_ref, b1_ref, w2T_ref, b2_ref, w3T_ref, b3_ref, o_ref):
    # x block keeps its HBM layout [TILE_B, 8]; dtype cast (if any) happens on
    # the VMEM-resident block, not as a separate wrapper HBM pass.
    x = x_ref[...].astype(w1T_ref.dtype)                              # [TILE_B, 8]
    # Layer 1: contract on the last dim of both operands (A @ B^T on the MXU)
    # -> [64, TILE_B]; batch lands on the 128-wide lane axis.
    h1 = lax.dot_general(w1T_ref[...], x, (((1,), (1,)), ((), ())),
                         preferred_element_type=jnp.float32)
    h1 = jnp.maximum(h1 + b1_ref[...], 0.0).astype(w2T_ref.dtype)
    # Layer 2: [32,64] @ [64,TILE_B] -> [32,TILE_B]
    h2 = jnp.dot(w2T_ref[...], h1, preferred_element_type=jnp.float32)
    h2 = jnp.maximum(h2 + b2_ref[...], 0.0).astype(w3T_ref.dtype)
    # Layer 3: [2,32] @ [32,TILE_B] -> [2,TILE_B]; lane-dense unmasked stores.
    o_ref[...] = (jnp.dot(w3T_ref[...], h2, preferred_element_type=jnp.float32)
                  + b3_ref[...]).astype(o_ref.dtype)


@functools.partial(jax.jit, static_argnames=("tile_b", "compute_dtype"))
def motor_effort_net(x, w1, b1, w2, b2, w3, b3, *, tile_b=32768,
                     compute_dtype="float32"):
    """Fused forward pass of MotorEffortNet.

    x:  [B, 8]   float32 (or bf16)
    w1: [8, 64]  b1: [1, 64]
    w2: [64, 32] b2: [1, 32]
    w3: [32, 2]  b3: [1, 2]
    returns [B, 2] float32
    """
    B = x.shape[0]
    cdt = jnp.dtype(compute_dtype)
    # Lane tiles must be multiples of 128 (and at least 128).
    tile_b = _round_up(max(int(tile_b), 128), 128)

    # Pad the batch only up to a 128-lane multiple (NOT to a full tile); the
    # ragged tail of the last grid step is handled by masked OOB stores.
    B_pad = _round_up(B, 128)
    x_in = x if B_pad == B else jnp.pad(x, ((0, B_pad - B), (0, 0)))

    # Cap tile so (a) per-step VMEM stays ~<15 MiB at f32 and (b) medium
    # batches still yield >= 2 grid steps so v7x can shard across its 2 TCs.
    tile = min(tile_b, _round_up(pl.cdiv(B_pad, 2), 128))
    grid = (pl.cdiv(B_pad, tile),)

    # Feature-major weights / column biases (tiny; VMEM-resident all steps).
    w1T = w1.T.astype(cdt)                       # [64, 8]
    w2T = w2.T.astype(cdt)                       # [32, 64]
    w3T = w3.T.astype(cdt)                       # [2, 32]
    b1c = b1.reshape(-1, 1).astype(jnp.float32)  # [64, 1]
    b2c = b2.reshape(-1, 1).astype(jnp.float32)  # [32, 1]
    b3c = b3.reshape(-1, 1).astype(jnp.float32)  # [2, 1]

    resident = lambda shape: pl.BlockSpec(shape, lambda i: (0, 0))

    cost = pl.CostEstimate(
        flops=2 * B_pad * (8 * 64 + 64 * 32 + 32 * 2),
        transcendentals=0,
        bytes_accessed=(B_pad * (8 * x.dtype.itemsize + 2 * 4)
                        + (8 * 64 + 64 * 32 + 32 * 2) * cdt.itemsize
                        + (64 + 32 + 2) * 4),
    )

    outT = pl.pallas_call(
        _mlp_kernel,
        out_shape=jax.ShapeDtypeStruct((2, B_pad), jnp.float32),
        grid=grid,
        in_specs=[
            pl.BlockSpec((tile, 8), lambda i: (i, 0)),   # x: one contiguous DMA
            resident((64, 8)),  resident((64, 1)),       # W1^T, b1
            resident((32, 64)), resident((32, 1)),       # W2^T, b2
            resident((2, 32)),  resident((2, 1)),        # W3^T, b3
        ],
        out_specs=pl.BlockSpec((2, tile), lambda i: (0, i)),  # lane-dense
        compiler_params=pltpu.CompilerParams(
            dimension_semantics=("parallel",),           # v7x: 2 TCs share batch
            vmem_limit_bytes=32 * 1024 * 1024,
        ),
        cost_estimate=cost,
    )(x_in, w1T, b1c, w2T, b2c, w3T, b3c)

    # TODO(synk): if the consumer can accept a [2, B] result, drop this small
    # extra transpose / HBM round trip.
    return outT[:, :B].T


def _init_params(key):
    """Deterministic, PyTorch-Linear-style uniform init."""
    ks = jax.random.split(key, 6)

    def linear_init(kw, kb, fan_in, fan_out):
        bound = 1.0 / jnp.sqrt(fan_in)
        w = jax.random.uniform(kw, (fan_in, fan_out), jnp.float32, -bound, bound)
        b = jax.random.uniform(kb, (1, fan_out), jnp.float32, -bound, bound)
        return w, b

    w1, b1 = linear_init(ks[0], ks[1], 8, 64)
    w2, b2 = linear_init(ks[2], ks[3], 64, 32)
    w3, b3 = linear_init(ks[4], ks[5], 32, 2)
    return w1, b1, w2, b2, w3, b3


def _reference(x, w1, b1, w2, b2, w3, b3):
    h1 = jnp.maximum(x @ w1 + b1, 0.0)
    h2 = jnp.maximum(h1 @ w2 + b2, 0.0)
    return h2 @ w3 + b3


if __name__ == "__main__":
    key = jax.random.PRNGKey(0)
    k_x, k_x2, k_p = jax.random.split(key, 3)
    params = _init_params(k_p)

    # Small batch: single grid step, padded to 128 lanes, masked tail stores.
    B = 8
    x = jax.random.normal(k_x, (B, 8), jnp.float32)
    out = jax.block_until_ready(motor_effort_net(x, *params))
    ref = _reference(x, *params)
    assert out.shape == (B, 2), out.shape
    assert jnp.allclose(out, ref, atol=1e-4, rtol=1e-4), "mismatch vs JAX reference (B=8)"

    # Ragged batch: cdiv grid (B_pad=384, tile=256 -> 2 steps, masked tail block).
    B2 = 300
    x2 = jax.random.normal(k_x2, (B2, 8), jnp.float32)
    out2 = jax.block_until_ready(motor_effort_net(x2, *params, tile_b=256))
    ref2 = _reference(x2, *params)
    assert out2.shape == (B2, 2), out2.shape
    assert jnp.allclose(out2, ref2, atol=1e-4, rtol=1e-4), "mismatch vs JAX reference (B=300)"

    # bf16 compute path (weights + intermediates bf16, f32 MXU accumulation):
    # relaxed tolerance vs. the f32 reference.
    out3 = jax.block_until_ready(
        motor_effort_net(x2, *params, tile_b=256, compute_dtype="bfloat16"))
    assert out3.shape == (B2, 2), out3.shape
    assert jnp.allclose(out3, ref2, atol=5e-2, rtol=5e-2), "mismatch vs JAX reference (bf16)"

    print("KERNEL_OK")
</pallas_src>

<mosaic_0001>
module attributes {stable_mosaic.version = 11 : i64} {
  func.func @_mlp_kernel(%arg0: i32, %arg1: memref<128x8xf32, #tpu.memory_space<vmem>>, %arg2: memref<64x8xf32, #tpu.memory_space<vmem>>, %arg3: memref<64x1xf32, #tpu.memory_space<vmem>>, %arg4: memref<32x64xf32, #tpu.memory_space<vmem>>, %arg5: memref<32x1xf32, #tpu.memory_space<vmem>>, %arg6: memref<2x32xf32, #tpu.memory_space<vmem>>, %arg7: memref<2x1xf32, #tpu.memory_space<vmem>>, %arg8: memref<2x128xf32, #tpu.memory_space<vmem>>) attributes {dimension_semantics = [#tpu.dimension_semantics<parallel>], iteration_bounds = array<i64: 1>, scalar_prefetch = 0 : i64, scratch_operands = 0 : i64, tpu.core_type = #tpu.core_type<tc>, window_params = [{transform_indices = @transform_0, window_bounds = array<i64: 128, 8>}, {pipeline_mode = #tpu.pipeline_mode<synchronous>, transform_indices = @transform_1, window_bounds = array<i64: 64, 8>}, {pipeline_mode = #tpu.pipeline_mode<synchronous>, transform_indices = @transform_2, window_bounds = array<i64: 64, 1>}, {pipeline_mode = #tpu.pipeline_mode<synchronous>, transform_indices = @transform_3, window_bounds = array<i64: 32, 64>}, {pipeline_mode = #tpu.pipeline_mode<synchronous>, transform_indices = @transform_4, window_bounds = array<i64: 32, 1>}, {pipeline_mode = #tpu.pipeline_mode<synchronous>, transform_indices = @transform_5, window_bounds = array<i64: 2, 32>}, {pipeline_mode = #tpu.pipeline_mode<synchronous>, transform_indices = @transform_6, window_bounds = array<i64: 2, 1>}, {transform_indices = @transform_7, window_bounds = array<i64: 2, 128>}]} {
    %c0 = arith.constant 0 : index
    %c0_0 = arith.constant 0 : index
    %0 = vector.load %arg1[%c0, %c0_0] : memref<128x8xf32, #tpu.memory_space<vmem>>, vector<128x8xf32>
    %c0_1 = arith.constant 0 : index
    %c0_2 = arith.constant 0 : index
    %1 = vector.load %arg2[%c0_1, %c0_2] : memref<64x8xf32, #tpu.memory_space<vmem>>, vector<64x8xf32>
    %cst = arith.constant dense<0.000000e+00> : vector<64x128xf32>
    %2 = tpu.matmul %1, %0, %cst {dimension_numbers = #tpu.dot_dimension_numbers<[1], [1], [0], [0], [0, 0, 1, 0], [], []>} : vector<64x8xf32>, vector<128x8xf32>, vector<64x128xf32> -> vector<64x128xf32>
    %c0_3 = arith.constant 0 : index
    %c0_4 = arith.constant 0 : index
    %3 = vector.load %arg3[%c0_3, %c0_4] : memref<64x1xf32, #tpu.memory_space<vmem>>, vector<64x1xf32>
    %4 = vector.broadcast %3 : vector<64x1xf32> to vector<64x128xf32>
    %5 = arith.addf %2, %4 : vector<64x128xf32>
    %cst_5 = arith.constant 0.000000e+00 : f32
    %6 = vector.broadcast %cst_5 : f32 to vector<64x128xf32>
    %7 = arith.maximumf %5, %6 : vector<64x128xf32>
    %c0_6 = arith.constant 0 : index
    %c0_7 = arith.constant 0 : index
    %8 = vector.load %arg4[%c0_6, %c0_7] : memref<32x64xf32, #tpu.memory_space<vmem>>, vector<32x64xf32>
    %cst_8 = arith.constant dense<0.000000e+00> : vector<32x128xf32>
    %9 = tpu.matmul %8, %7, %cst_8 {dimension_numbers = #tpu.dot_dimension_numbers<[1], [0], [0], [1], [0, 0, 1, 1], [], []>} : vector<32x64xf32>, vector<64x128xf32>, vector<32x128xf32> -> vector<32x128xf32>
    %c0_9 = arith.constant 0 : index
    %c0_10 = arith.constant 0 : index
    %10 = vector.load %arg5[%c0_9, %c0_10] : memref<32x1xf32, #tpu.memory_space<vmem>>, vector<32x1xf32>
    %11 = vector.broadcast %10 : vector<32x1xf32> to vector<32x128xf32>
    %12 = arith.addf %9, %11 : vector<32x128xf32>
    %cst_11 = arith.constant 0.000000e+00 : f32
    %13 = vector.broadcast %cst_11 : f32 to vector<32x128xf32>
    %14 = arith.maximumf %12, %13 : vector<32x128xf32>
    %c0_12 = arith.constant 0 : index
    %c0_13 = arith.constant 0 : index
    %15 = vector.load %arg6[%c0_12, %c0_13] : memref<2x32xf32, #tpu.memory_space<vmem>>, vector<2x32xf32>
    %cst_14 = arith.constant dense<0.000000e+00> : vector<2x128xf32>
    %16 = tpu.matmul %15, %14, %cst_14 {dimension_numbers = #tpu.dot_dimension_numbers<[1], [0], [0], [1], [0, 0, 1, 1], [], []>} : vector<2x32xf32>, vector<32x128xf32>, vector<2x128xf32> -> vector<2x128xf32>
    %c0_15 = arith.constant 0 : index
    %c0_16 = arith.constant 0 : index
    %17 = vector.load %arg7[%c0_15, %c0_16] : memref<2x1xf32, #tpu.memory_space<vmem>>, vector<2x1xf32>
    %18 = vector.broadcast %17 : vector<2x1xf32> to vector<2x128xf32>
    %19 = arith.addf %16, %18 : vector<2x128xf32>
    %c0_17 = arith.constant 0 : index
    %c0_18 = arith.constant 0 : index
    %20 = vector.load %arg8[%c0_17, %c0_18] : memref<2x128xf32, #tpu.memory_space<vmem>>, vector<2x128xf32>
    tpu.vector_store %arg8[%c0_17, %c0_18], %19 {strides = array<i32>} : memref<2x128xf32, #tpu.memory_space<vmem>>, vector<2x128xf32>,
    return
  }
  func.func @transform_0(%arg0: i32) -> (i32, i32) {
    %c0_i32 = arith.constant 0 : i32
    %c0_i32_0 = arith.constant 0 : i32
    return %arg0, %c0_i32 : i32, i32
  }
  func.func @transform_1(%arg0: i32) -> (i32, i32) {
    %c0_i32 = arith.constant 0 : i32
    %c0_i32_0 = arith.constant 0 : i32
    %c0_i32_1 = arith.constant 0 : i32
    return %c0_i32, %c0_i32_0 : i32, i32
  }
  func.func @transform_2(%arg0: i32) -> (i32, i32) {
    %c0_i32 = arith.constant 0 : i32
    %c0_i32_0 = arith.constant 0 : i32
    %c0_i32_1 = arith.constant 0 : i32
    return %c0_i32, %c0_i32_0 : i32, i32
  }
  func.func @transform_3(%arg0: i32) -> (i32, i32) {
    %c0_i32 = arith.constant 0 : i32
    %c0_i32_0 = arith.constant 0 : i32
    %c0_i32_1 = arith.constant 0 : i32
    return %c0_i32, %c0_i32_0 : i32, i32
  }
  func.func @transform_4(%arg0: i32) -> (i32, i32) {
    %c0_i32 = arith.constant 0 : i32
    %c0_i32_0 = arith.constant 0 : i32
    %c0_i32_1 = arith.constant 0 : i32
    return %c0_i32, %c0_i32_0 : i32, i32
  }
  func.func @transform_5(%arg0: i32) -> (i32, i32) {
    %c0_i32 = arith.constant 0 : i32
    %c0_i32_0 = arith.constant 0 : i32
    %c0_i32_1 = arith.constant 0 : i32
    return %c0_i32, %c0_i32_0 : i32, i32
  }
  func.func @transform_6(%arg0: i32) -> (i32, i32) {
    %c0_i32 = arith.constant 0 : i32
    %c0_i32_0 = arith.constant 0 : i32
    %c0_i32_1 = arith.constant 0 : i32
    return %c0_i32, %c0_i32_0 : i32, i32
  }
  func.func @transform_7(%arg0: i32) -> (i32, i32) {
    %c0_i32 = arith.constant 0 : i32
    %c0_i32_0 = arith.constant 0 : i32
    return %c0_i32, %arg0 : i32, i32
  }
}

</mosaic_0001>

<bundles_post_ra>
// kernel: motor_effort_net.1
= control target key start
LH: loop header
LB: loop body
LE: loop exit
PB: predicated region body
PF: predicated region fallthrough
CT: control target
= control target key end

     0   :  { %vm98_vm0 = vcmask 64512   ;;  %v723_v3 = vmov 0   ;;  %vm312_vm2 = vcmask 523264   ;;  %vm725_vm3 = vmmov 0   ;;  %s946_s0 = inlined_call_operand.vmem [shape: f32[128,8], index: 0, kind: input, shape index: {}]   ;;  %s947_s1 = inlined_call_operand.vmem [shape: f32[64,8], index: 1, kind: input, shape index: {}]   ;;  %s948_s2 = inlined_call_operand.vmem [shape: f32[64,1], index: 2, kind: input, shape index: {}]   ;;  %s949_s4 = inlined_call_operand.vmem [shape: f32[32,1], index: 4, kind: input, shape index: {}]   ;;  %s950_s6 = inlined_call_operand.vmem [shape: f32[2,1], index: 6, kind: input, shape index: {}]   ;;  %s951_s3 = inlined_call_operand.vmem [shape: f32[32,64], index: 3, kind: input, shape index: {}]   ;;  %s952_s5 = inlined_call_operand.vmem [shape: f32[2,32], index: 5, kind: input, shape index: {}]   ;;  %s953_s7 = inlined_call_operand.vmem [shape: f32[2,128], index: 7, kind: output, shape index: {}]  }
   0x1   :  { %v26_v0 = vld [vmem:[%s946_s0] sm:$0xff]  ;;  %v27_v1 = vld [vmem:[%s946_s0 + $0x8] sm:$0xff]  ;;  %vm775_vm1 = vmpackc.low %vm98_vm0, %vm98_vm0  ;;  %721 = vset.pattern.permute.xlu0 %v723_v3  ;;  %722 = vset.pattern.permute.xlu1 %v723_v3  ;;  %vm421_vm4 = vcmask 261120  }
   0x2   :  { %v647_v4 = vpack.c.bf16 %v27_v1, %v26_v0  ;;  %v28_v5 = vld [vmem:[%s946_s0 + $0x10] sm:$0xff]  ;;  %v29_v6 = vld [vmem:[%s946_s0 + $0x18] sm:$0xff]  ;;  %v42_v8 = vld [vmem:[%s947_s1] sm:$0xff] }
   0x3   :  { %v653_v7 = vpack.c.bf16 %v29_v6, %v28_v5  ;;  %v30_v9 = vld [vmem:[%s946_s0 + $0x20] sm:$0xff]  ;;  %v31_v10 = vld [vmem:[%s946_s0 + $0x28] sm:$0xff]  ;;  %602 = vmatprep.mubr.msk.f32.mxu0 %vm98_vm0, %v42_v8  ;;  %v52_v13 = vld [vmem:[%s948_s2 + $0x10] sm:$0xff] }
   0x4   :  { %649 = vmatprep.subr.msk.bf16.mxu0 %vm775_vm1, %v647_v4  ;;  %v50_v11 = vld [vmem:[%s948_s2] sm:$0xff]  ;;  %v659_v12 = vpack.c.bf16 %v31_v10, %v30_v9  ;;  %v51_v14 = vld [vmem:[%s948_s2 + $0x8] sm:$0xff]  ;;  %70 = vperm.xlu1 %722, %v52_v13   ;;  %v53_v15 = vld [vmem:[%s948_s2 + $0x18] sm:$0xff] }
   0x5   :  { %652 = vmatpush3.bf16.xpose.msk.msra.mxu0 %vm775_vm1, %v647_v4  ;;  %60 = vperm.xlu0 %721, %v50_v11   ;;  %v32_v16 = vld [vmem:[%s946_s0 + $0x30] sm:$0xff]  ;;  %v33_v17 = vld [vmem:[%s946_s0 + $0x38] sm:$0xff]  ;;  %v54_v18 = vld [vmem:[%s948_s2 + $0x20] sm:$0xff] }
   0x6   :  { %655 = vmatprep.subr.msk.bf16.mxu0 %vm775_vm1, %v653_v7  ;;  %v55_v19 = vld [vmem:[%s948_s2 + $0x28] sm:$0xff]  ;;  %v665_v20 = vpack.c.bf16 %v33_v17, %v32_v16  ;;  %v56_v21 = vld [vmem:[%s948_s2 + $0x30] sm:$0xff]  ;;  %v57_v22 = vld [vmem:[%s948_s2 + $0x38] sm:$0xff] }
   0x7   :  { %v34_v23 = vld [vmem:[%s946_s0 + $0x40] sm:$0xff]  ;;  %v35_v24 = vld [vmem:[%s946_s0 + $0x48] sm:$0xff]  ;;  %v290_v28 = vld [vmem:[%s949_s4 + $0x10] sm:$0xff] }
   0x8   :  { %75 = vperm.xlu1 %722, %v53_v15   ;;  %v288_v25 = vld [vmem:[%s949_s4] sm:$0xff]  ;;  %v289_v26 = vld [vmem:[%s949_s4 + $0x8] sm:$0xff]  ;;  %v671_v27 = vpack.c.bf16 %v35_v24, %v34_v23  ;;  %v291_v29 = vld [vmem:[%s949_s4 + $0x18] sm:$0xff]  ;;  %v724_v23 = vmov 0.0|0.0   ;;  %v726_v24 = vmov 0.0  }
   0x9   :  { %65 = vperm.xlu0 %721, %v51_v14   ;;  %v36_v30 = vld [vmem:[%s946_s0 + $0x50] sm:$0xff]  ;;  %v37_v31 = vld [vmem:[%s946_s0 + $0x58] sm:$0xff]  ;;  %v415_v32 = vld [vmem:[%s950_s6] sm:$0x3] }
   0xa   :  { %v677_v33 = vpack.c.bf16 %v37_v31, %v36_v30  ;;  %v38_v34 = vld [vmem:[%s946_s0 + $0x60] sm:$0xff]  ;;  %v39_v35 = vld [vmem:[%s946_s0 + $0x68] sm:$0xff]  ;;  %v40_v37 = vld [vmem:[%s946_s0 + $0x70] sm:$0xff] }
   0xb   :  { %v683_v36 = vpack.c.bf16 %v39_v35, %v38_v34  ;;  %v41_v38 = vld [vmem:[%s946_s0 + $0x78] sm:$0xff]  ;;  %v43_v40 = vld [vmem:[%s947_s1 + $0x8] sm:$0xff]  ;;  %v44_v41 = vld [vmem:[%s947_s1 + $0x10] sm:$0xff] }
   0xc   :  { %85 = vperm.xlu1 %722, %v55_v19   ;;  %v689_v39 = vpack.c.bf16 %v41_v38, %v40_v37  ;;  %v45_v42 = vld [vmem:[%s947_s1 + $0x18] sm:$0xff]  ;;  %v46_v43 = vld [vmem:[%s947_s1 + $0x20] sm:$0xff]  ;;  %v47_v44 = vld [vmem:[%s947_s1 + $0x28] sm:$0xff] }
   0xd   :  { %658 = vmatpush3.bf16.xpose.msk.msra.mxu0 %vm775_vm1, %v653_v7  ;;  %80 = vperm.xlu0 %721, %v54_v18   ;;  %v48_v45 = vld [vmem:[%s947_s1 + $0x30] sm:$0xff]  ;;  %v49_v46 = vld [vmem:[%s947_s1 + $0x38] sm:$0xff]  ;;  %v284_v47 = vld [vmem:[%s951_s3] sm:$0xff] }
   0xe   :  { %661 = vmatprep.subr.msk.bf16.mxu0 %vm775_vm1, %v659_v12  ;;  %630 = vmatprep.mubr.msk.f32.mxu1 %vm312_vm2, %v284_v47 }
  0x10   :  { %95 = vperm.xlu1 %722, %v57_v22   ;;  %v287_v22 = vld [vmem:[%s951_s3 + $0x18] sm:$0xff] }
  0x11   :  { %90 = vperm.xlu0 %721, %v56_v21   ;;  %v286_v21 = vld [vmem:[%s951_s3 + $0x10] sm:$0xff] }
  0x14   :  { %299 = vperm.xlu1 %722, %v289_v26  }
  0x15   :  { %664 = vmatpush3.bf16.xpose.msk.msra.mxu0 %vm775_vm1, %v659_v12  ;;  %294 = vperm.xlu0 %721, %v288_v25  }
  0x16   :  { %667 = vmatprep.subr.msk.bf16.mxu0 %vm775_vm1, %v665_v20 }
  0x18   :  { %309 = vperm.xlu1 %722, %v291_v29  }
  0x19   :  { %304 = vperm.xlu0 %721, %v290_v28  }
  0x1d   :  { %670 = vmatpush3.bf16.xpose.msk.msra.mxu0 %vm775_vm1, %v665_v20  ;;  %418 = vperm.xlu0 %721, %v415_v32   ;;  %v285_v20 = vld [vmem:[%s951_s3 + $0x8] sm:$0xff] }
  0x1e   :  { %673 = vmatprep.subr.msk.bf16.mxu0 %vm775_vm1, %v671_v27 }
  0x25   :  { %676 = vmatpush3.bf16.xpose.msk.msra.mxu0 %vm775_vm1, %v671_v27 }
  0x26   :  { %679 = vmatprep.subr.msk.bf16.mxu0 %vm775_vm1, %v677_v33 }
  0x2d   :  { %682 = vmatpush3.bf16.xpose.msk.msra.mxu0 %vm775_vm1, %v677_v33 }
  0x2e   :  { %685 = vmatprep.subr.msk.bf16.mxu0 %vm775_vm1, %v683_v36 }
  0x35   :  { %688 = vmatpush3.bf16.xpose.msk.msra.mxu0 %vm775_vm1, %v683_v36 }
  0x36   :  { %691 = vmatprep.subr.msk.bf16.mxu0 %vm775_vm1, %v689_v39 }
  0x3d   :  { %694 = vmatpush3.bf16.xpose.msk.msra.mxu0 %vm775_vm1, %v689_v39 }
  0x44   :  { %603 = vmatmul.mubr.msk.f32.vlgmr.msra.gmra.mrb[0].mxu0 %vm98_vm0, %v43_v40 }
  0x45   :  { %605 = vmatprep.mubr.msk.f32.mxu0 %vm98_vm0, %v44_v41 }
  0x48   :  { %606 = vmatmul.mubr.msk.f32.gmra.mrb[2].mxu0 %vm98_vm0, %v45_v42 }
  0x49   :  { %608 = vmatprep.mubr.msk.f32.mxu0 %vm98_vm0, %v46_v43  ;;  %v414_v43 = vld [vmem:[%s952_s5] sm:$0x3] }
  0x4c   :  { %609 = vmatmul.mubr.msk.f32.gmra.mrb[4].mxu0 %vm98_vm0, %v47_v44 }
  0x4d   :  { %611 = vmatprep.mubr.msk.f32.mxu0 %vm98_vm0, %v48_v45 }
  0x50   :  { %612 = vmatmul.mubr.msk.f32.gmra.mrb[6].mxu0 %vm98_vm0, %v49_v46 }
  0x83   :  { %v71_v49 = vpop.permute.xlu1 %70 }
  0x84   :  { %v61_v48 = vpop.permute.xlu0 %60 }
  0x87   :  { %v76_v51 = vpop.permute.xlu1 %75 }
  0x88   :  { %v66_v50 = vpop.permute.xlu0 %65 }
  0x8b   :  { %v86_v61 = vpop.permute.xlu1 %85 }
  0x8c   :  { %v81_v0 = vpop.permute.xlu0 %80 }
  0x8f   :  { %v96_v9 = vpop.permute.xlu1 %95 }
  0x90   :  { %v91_v12 = vpop.permute.xlu0 %90 }
  0x93   :  { %v300_v25 = vpop.permute.xlu1 %299 }
  0x94   :  { %v295_v26 = vpop.permute.xlu0 %294 }
  0x97   :  { %v310_v32 = vpop.permute.xlu1 %309 }
  0x98   :  { %v305_v35 = vpop.permute.xlu0 %304 }
  0x9c   :  { %v419_v44 = vpop.permute.xlu0 %418 }
 0x117   :  { %v604_v52 = vpop.f32.mrb[0].mxu0 }
 0x118   :  { %v243_v53 = vadd.f32 %v604_v52, %v66_v50  ;;  %v237_v54 = vpop.f32.mrb[1].mxu0 }
 0x119   :  { %v238_v55 = vadd.f32 %v237_v54, %v61_v48 }
 0x11a   :  { %v277_v56 = vmax.f32 %v243_v53, 0.0 }
 0x11b   :  { %v276_v57 = vmax.f32 %v238_v55, 0.0  ;;  %v607_v58 = vpop.f32.mrb[2].mxu0 }
 0x11c   :  { %v253_v59 = vadd.f32 %v607_v58, %v76_v51  ;;  %v247_v60 = vpop.f32.mrb[3].mxu0 }
 0x11d   :  { %v248_v62 = vadd.f32 %v247_v60, %v71_v49  ;;  %v695_v63 = vpack.c.bf16 %v277_v56, %v276_v57 }
 0x11e   :  { %v279_v1 = vmax.f32 %v253_v59, 0.0 }
 0x11f   :  { %v278_v2 = vmax.f32 %v248_v62, 0.0  ;;  %v610_v3 = vpop.f32.mrb[4].mxu0  ;;  %696 = vmatprep.subr.bf16.mxu1 %v695_v63 }
 0x120   :  { %v263_v4 = vadd.f32 %v610_v3, %v86_v61  ;;  %v257_v5 = vpop.f32.mrb[5].mxu0  ;;  %698 = vmatpush3.bf16.msra.mxu1 %v695_v63 }
 0x121   :  { %v699_v6 = vpack.c.bf16 %v279_v1, %v278_v2  ;;  %v258_v7 = vadd.f32 %v257_v5, %v81_v0 }
 0x122   :  { %v281_v8 = vmax.f32 %v263_v4, 0.0 }
 0x123   :  { %v280_v10 = vmax.f32 %v258_v7, 0.0  ;;  %v613_v11 = vpop.f32.mrb[6].mxu0  ;;  %700 = vmatprep.subr.bf16.mxu1 %v699_v6 }
 0x124   :  { %v273_v13 = vadd.f32 %v613_v11, %v96_v9  ;;  %v267_v14 = vpop.f32.mrb[7].mxu0  ;;  %702 = vmatpush3.bf16.msra.mxu1 %v699_v6 }
 0x125   :  { %v703_v15 = vpack.c.bf16 %v281_v8, %v280_v10  ;;  %v268_v16 = vadd.f32 %v267_v14, %v91_v12 }
 0x126   :  { %v283_v17 = vmax.f32 %v273_v13, 0.0 }
 0x127   :  { %v282_v18 = vmax.f32 %v268_v16, 0.0  ;;  %704 = vmatprep.subr.bf16.mxu1 %v703_v15 }
 0x128   :  { %706 = vmatpush3.bf16.msra.mxu1 %v703_v15 }
 0x129   :  { %v707_v19 = vpack.c.bf16 %v283_v17, %v282_v18 }
 0x12b   :  { %708 = vmatprep.subr.bf16.mxu1 %v707_v19 }
 0x12c   :  { %710 = vmatpush3.bf16.msra.mxu1 %v707_v19 }
 0x12d   :  { %711 = vmatprep.subr.bf16.mxu1 %v724_v23 }
 0x12f   :  { %631 = vmatmul.mubr.msk.f32.vlgmr.msra.gmra.mrb[0].mxu1 %vm312_vm2, %v285_v20 }
 0x130   :  { %633 = vmatprep.mubr.msk.f32.mxu1 %vm312_vm2, %v286_v21 }
 0x133   :  { %634 = vmatmul.mubr.msk.f32.gmra.mrb[2].mxu1 %vm312_vm2, %v287_v22 }
 0x134   :  { %644 = vmatprep.mubr.msk.f32.mxu1 %vm725_vm3, %v726_v24 }
 0x202   :  { %v632_v27 = vpop.f32.mrb[0].mxu1 }
 0x203   :  { %v397_v28 = vadd.f32 %v632_v27, %v300_v25  ;;  %v391_v29 = vpop.f32.mrb[1].mxu1 }
 0x204   :  { %v392_v30 = vadd.f32 %v391_v29, %v295_v26 }
 0x205   :  { %v411_v31 = vmax.f32 %v397_v28, 0.0 }
 0x206   :  { %v410_v33 = vmax.f32 %v392_v30, 0.0  ;;  %v635_v34 = vpop.f32.mrb[2].mxu1 }
 0x207   :  { %v407_v36 = vadd.f32 %v635_v34, %v310_v32  ;;  %v401_v37 = vpop.f32.mrb[3].mxu1 }
 0x208   :  { %v712_v38 = vpack.c.bf16 %v411_v31, %v410_v33  ;;  %v402_v39 = vadd.f32 %v401_v37, %v305_v35 }
 0x209   :  { %v413_v40 = vmax.f32 %v407_v36, 0.0 }
 0x20a   :  { %v412_v41 = vmax.f32 %v402_v39, 0.0  ;;  %713 = vmatpush3.bf16.msra.mxu1 %v712_v38 }
 0x20b   :  { %714 = vmatprep.subr.bf16.mxu1 %v724_v23 }
 0x20c   :  { %v715_v42 = vpack.c.bf16 %v413_v40, %v412_v41 }
 0x20e   :  { %716 = vmatpush3.bf16.msra.mxu1 %v715_v42 }
 0x211   :  { %645 = vmatmul.mubr.msk.f32.vlgmr.msra.gmra.mrb[4].mxu1 %vm421_vm4, %v414_v43 }
 0x2e4   :  { %v491_v45 = vpop.f32.mrb[4].mxu1 }
 0x2e5   :  { %v492_v46 = vadd.f32 %v491_v45, %v419_v44  ;;  %v646_v47 = vpop.f32.mrb[5].mxu1 }
 0x2e7   :  { %495 = vst [vmem:[%s953_s7] sm:$0x3] %v492_v46 }

</bundles_post_ra>
